<compile_context>
chip_gen: v6e
topology: v6e:2x2x1
jax: 0.10.0
libtpu: 0.0.40
codegen_flags: <defaults>
</compile_context>

<pallas_src>
import functools

import jax
import jax.numpy as jnp
from jax.experimental import pallas as pl
from jax.experimental.pallas import tpu as pltpu

LANE = 128


def _round_up(x, m):
    return (x + m - 1) // m * m


def _choose_tiles(n):
    """Tile sizes for streaming A_norm; (8,128)-aligned, 512 when possible."""
    if n <= 512:
        tm = tk = _round_up(max(n, 1), LANE)
    else:
        tm = tk = 512
    n_pad = _round_up(n, tm)  # tm == tk, so divisible by both
    return n_pad, tm, tk


# ----------------------------------------------------------------------------
# Layer-1 kernel: acc += A_tile @ XW1_tile ; epilogue: ReLU(acc+b1) @ W2 -> bf16
# ----------------------------------------------------------------------------
def gcn_layer1_kernel(a_ref, xw_ref, b1_ref, w2_ref, o_ref, acc_ref):
    k = pl.program_id(1)

    @pl.when(k == 0)
    def _():
        acc_ref[...] = jnp.zeros_like(acc_ref)

    # bf16 x bf16 -> f32 accumulate on the MXU
    acc_ref[...] += jnp.dot(a_ref[...], xw_ref[...],
                            preferred_element_type=jnp.float32)

    @pl.when(k == pl.num_programs(1) - 1)
    def _():
        h = jnp.maximum(acc_ref[...] + b1_ref[...], 0.0)          # ReLU(A@XW1+b1)
        # Fused projection for layer 2: (tm, Fh) @ (Fh, Fo) -> XW2 tile
        xw2 = jnp.dot(h.astype(jnp.bfloat16), w2_ref[...],
                      preferred_element_type=jnp.float32)
        o_ref[...] = xw2.astype(o_ref.dtype)                      # bf16 out


def gcn_layer1(a_pad, xw1_pad, b1_pad, w2_pad, *, tm, tk):
    n_pad = a_pad.shape[0]
    fh_pad = xw1_pad.shape[1]
    fo_pad = w2_pad.shape[1]
    grid = (n_pad // tm, n_pad // tk)

    return pl.pallas_call(
        gcn_layer1_kernel,
        out_shape=jax.ShapeDtypeStruct((n_pad, fo_pad), jnp.bfloat16),
        grid_spec=pltpu.PrefetchScalarGridSpec(
            num_scalar_prefetch=0,
            grid=grid,
            in_specs=[
                pl.BlockSpec((tm, tk), lambda i, k: (i, k)),        # A tile stream
                pl.BlockSpec((tk, fh_pad), lambda i, k: (k, 0)),    # XW1 tile
                pl.BlockSpec((1, fh_pad), lambda i, k: (0, 0)),     # bias1
                pl.BlockSpec((fh_pad, fo_pad), lambda i, k: (0, 0)),  # W2 (resident)
            ],
            out_specs=pl.BlockSpec((tm, fo_pad), lambda i, k: (i, 0)),
            scratch_shapes=[pltpu.VMEM((tm, fh_pad), jnp.float32)],
        ),
        compiler_params=pltpu.CompilerParams(
            dimension_semantics=("parallel", "arbitrary"),
        ),
    )(a_pad, xw1_pad, b1_pad, w2_pad)


# ----------------------------------------------------------------------------
# Layer-2 kernel: acc += A_tile @ XW2_tile ; epilogue: +b2, masked log_softmax
# ----------------------------------------------------------------------------
def gcn_layer2_kernel(a_ref, xw_ref, b2_ref, o_ref, acc_ref, *, n_valid_cols):
    k = pl.program_id(1)

    @pl.when(k == 0)
    def _():
        acc_ref[...] = jnp.zeros_like(acc_ref)

    acc_ref[...] += jnp.dot(a_ref[...], xw_ref[...],
                            preferred_element_type=jnp.float32)

    @pl.when(k == pl.num_programs(1) - 1)
    def _():
        out = acc_ref[...] + b2_ref[...]
        # log_softmax over the (real) class axis; padded lanes masked out
        col = jax.lax.broadcasted_iota(jnp.int32, out.shape, 1)
        masked = jnp.where(col < n_valid_cols, out, -1e30)
        m = jnp.max(masked, axis=-1, keepdims=True)
        shifted = masked - m
        lse = jnp.log(jnp.sum(jnp.exp(shifted), axis=-1, keepdims=True))
        o_ref[...] = (shifted - lse).astype(o_ref.dtype)


def gcn_layer2(a_pad, xw2_pad, b2_pad, *, tm, tk, n_valid_cols):
    n_pad = a_pad.shape[0]
    fo_pad = xw2_pad.shape[1]
    grid = (n_pad // tm, n_pad // tk)

    kernel = functools.partial(gcn_layer2_kernel, n_valid_cols=n_valid_cols)

    return pl.pallas_call(
        kernel,
        out_shape=jax.ShapeDtypeStruct((n_pad, fo_pad), jnp.float32),
        grid_spec=pltpu.PrefetchScalarGridSpec(
            num_scalar_prefetch=0,
            grid=grid,
            in_specs=[
                pl.BlockSpec((tm, tk), lambda i, k: (i, k)),        # A tile stream
                pl.BlockSpec((tk, fo_pad), lambda i, k: (k, 0)),    # XW2 tile
                pl.BlockSpec((1, fo_pad), lambda i, k: (0, 0)),     # bias2
            ],
            out_specs=pl.BlockSpec((tm, fo_pad), lambda i, k: (i, 0)),
            scratch_shapes=[pltpu.VMEM((tm, fo_pad), jnp.float32)],
        ),
        compiler_params=pltpu.CompilerParams(
            dimension_semantics=("parallel", "arbitrary"),
        ),
    )(a_pad, xw2_pad, b2_pad)


# ----------------------------------------------------------------------------
# Glue: dense symmetric-normalized adjacency from edge_index (gcn_norm)
# ----------------------------------------------------------------------------
def build_norm_adj(edge_index, num_nodes):
    edge_index = edge_index.astype(jnp.int32)
    src, dst = edge_index[0], edge_index[1]
    a = jnp.zeros((num_nodes, num_nodes), jnp.float32)
    # messages flow src -> dst, aggregated at dst (row = target node)
    a = a.at[dst, src].set(1.0)
    # add remaining self loops
    a = jnp.maximum(a, jnp.eye(num_nodes, dtype=jnp.float32))
    deg = jnp.sum(a, axis=1)
    dinv_sqrt = jnp.where(deg > 0, 1.0 / jnp.sqrt(deg), 0.0)
    return dinv_sqrt[:, None] * a * dinv_sqrt[None, :]


# ----------------------------------------------------------------------------
# GCN module (forward only)
# ----------------------------------------------------------------------------
def init_gcn_params(key, in_channels, out_channels, intermediate_channels=16):
    k1, k2 = jax.random.split(key)

    def glorot(k, fan_in, fan_out):
        limit = jnp.sqrt(6.0 / (fan_in + fan_out))
        return jax.random.uniform(k, (fan_in, fan_out), jnp.float32,
                                  minval=-limit, maxval=limit)

    return {
        "w1": glorot(k1, in_channels, intermediate_channels),
        "b1": jnp.zeros((1, intermediate_channels), jnp.float32),
        "w2": glorot(k2, intermediate_channels, out_channels),
        "b2": jnp.zeros((1, out_channels), jnp.float32),
    }


@jax.jit
def gcn_forward(params, x, edge_index):
    n = x.shape[0]
    n_pad, tm, tk = _choose_tiles(n)

    # normalized adjacency, zero-padded to (n_pad, n_pad), streamed as bf16
    a = build_norm_adj(edge_index, n)
    a_pad = jnp.zeros((n_pad, n_pad), jnp.float32).at[:n, :n].set(a)
    a_pad = a_pad.astype(jnp.bfloat16)

    f_hidden = params["w1"].shape[1]
    f_out = params["w2"].shape[1]
    fh_pad = _round_up(f_hidden, LANE)
    fo_pad = _round_up(f_out, LANE)

    # lane-pad weights / biases to 128 columns (zeros keep the math unchanged)
    w1p = jnp.zeros((params["w1"].shape[0], fh_pad),
                    jnp.float32).at[:, :f_hidden].set(params["w1"])
    b1p = jnp.zeros((1, fh_pad), jnp.float32).at[:, :f_hidden].set(params["b1"])
    w2p = jnp.zeros((fh_pad, fo_pad),
                    jnp.float32).at[:f_hidden, :f_out].set(params["w2"])
    b2p = jnp.zeros((1, fo_pad), jnp.float32).at[:, :f_out].set(params["b2"])

    # ---- layer 1 (+ fused W2 projection):  XW2 = ReLU(A @ (X@W1) + b1) @ W2 ----
    xw1 = jnp.zeros((n_pad, fh_pad), jnp.float32).at[:n].set(x @ w1p)
    xw2 = gcn_layer1(a_pad, xw1.astype(jnp.bfloat16), b1p,
                     w2p.astype(jnp.bfloat16), tm=tm, tk=tk)

    # ---- layer 2: aggregation + bias + masked log_softmax ----
    out = gcn_layer2(a_pad, xw2, b2p, tm=tm, tk=tk, n_valid_cols=f_out)

    return out[:n, :f_out]


# ----------------------------------------------------------------------------
# Demo
# ----------------------------------------------------------------------------
if __name__ == "__main__":
    key = jax.random.PRNGKey(0)
    k_x, k_p = jax.random.split(key)

    num_nodes = 8
    in_channels = 4
    out_channels = 4
    intermediate_channels = 16

    # node features (N, F_in)
    x = jax.random.normal(k_x, (num_nodes, in_channels), jnp.float32)

    # small deterministic edge list (2, E): a ring + a few chords
    src = jnp.array([0, 1, 2, 3, 4, 5, 6, 7, 0, 2, 4, 6], dtype=jnp.int32)
    dst = jnp.array([1, 2, 3, 4, 5, 6, 7, 0, 4, 6, 0, 2], dtype=jnp.int32)
    edge_index = jnp.stack([src, dst], axis=0)

    params = init_gcn_params(k_p, in_channels, out_channels,
                             intermediate_channels)

    out = gcn_forward(params, x, edge_index)
    jax.block_until_ready(out)

    assert out.shape == (num_nodes, out_channels)
    # rows of log_softmax must sum (in prob space) to 1
    row_sums = jnp.exp(out).sum(axis=1)
    assert jnp.allclose(row_sums, 1.0, atol=1e-5)
    assert bool(jnp.all(jnp.isfinite(out)))

    print("KERNEL_OK")
</pallas_src>

<mosaic_0001>
module attributes {stable_mosaic.version = 11 : i64} {
  func.func @gcn_layer1_kernel(%arg0: i32, %arg1: i32, %arg2: memref<128x128xbf16, #tpu.memory_space<vmem>>, %arg3: memref<128x128xbf16, #tpu.memory_space<vmem>>, %arg4: memref<1x128xf32, #tpu.memory_space<vmem>>, %arg5: memref<128x128xbf16, #tpu.memory_space<vmem>>, %arg6: memref<128x128xbf16, #tpu.memory_space<vmem>>, %arg7: memref<128x128xf32, #tpu.memory_space<vmem>>) attributes {dimension_semantics = [#tpu.dimension_semantics<parallel>, #tpu.dimension_semantics<arbitrary>], iteration_bounds = array<i64: 1, 1>, scalar_prefetch = 0 : i64, scratch_operands = 1 : i64, tpu.core_type = #tpu.core_type<tc>, window_params = [{transform_indices = @transform_0, window_bounds = array<i64: 128, 128>}, {transform_indices = @transform_1, window_bounds = array<i64: 128, 128>}, {pipeline_mode = #tpu.pipeline_mode<synchronous>, transform_indices = @transform_2, window_bounds = array<i64: 1, 128>}, {pipeline_mode = #tpu.pipeline_mode<synchronous>, transform_indices = @transform_3, window_bounds = array<i64: 128, 128>}, {transform_indices = @transform_4, window_bounds = array<i64: 128, 128>}]} {
    %c0_i32 = arith.constant 0 : i32
    %0 = arith.cmpi eq, %arg1, %c0_i32 : i32
    %1 = arith.extui %0 : i1 to i32
    %c0_i32_0 = arith.constant 0 : i32
    %2 = arith.cmpi ne, %1, %c0_i32_0 : i32
    scf.if %2 {
      %cst_10 = arith.constant 0.000000e+00 : f32
      %12 = vector.broadcast %cst_10 : f32 to vector<128x128xf32>
      %c0_11 = arith.constant 0 : index
      %c0_12 = arith.constant 0 : index
      %13 = vector.load %arg7[%c0_11, %c0_12] : memref<128x128xf32, #tpu.memory_space<vmem>>, vector<128x128xf32>
      tpu.vector_store %arg7[%c0_11, %c0_12], %12 {strides = array<i32>} : memref<128x128xf32, #tpu.memory_space<vmem>>, vector<128x128xf32>,
    } else {
    }
    %c0 = arith.constant 0 : index
    %c0_1 = arith.constant 0 : index
    %3 = vector.load %arg7[%c0, %c0_1] : memref<128x128xf32, #tpu.memory_space<vmem>>, vector<128x128xf32>
    %c0_2 = arith.constant 0 : index
    %c0_3 = arith.constant 0 : index
    %4 = vector.load %arg2[%c0_2, %c0_3] : memref<128x128xbf16, #tpu.memory_space<vmem>>, vector<128x128xbf16>
    %c0_4 = arith.constant 0 : index
    %c0_5 = arith.constant 0 : index
    %5 = vector.load %arg3[%c0_4, %c0_5] : memref<128x128xbf16, #tpu.memory_space<vmem>>, vector<128x128xbf16>
    %cst = arith.constant dense<0.000000e+00> : vector<128x128xf32>
    %6 = tpu.matmul %4, %5, %cst {dimension_numbers = #tpu.dot_dimension_numbers<[1], [0], [0], [1], [0, 0, 1, 1], [], []>} : vector<128x128xbf16>, vector<128x128xbf16>, vector<128x128xf32> -> vector<128x128xf32>
    %7 = arith.addf %3, %6 : vector<128x128xf32>
    %c0_6 = arith.constant 0 : index
    %c0_7 = arith.constant 0 : index
    %8 = vector.load %arg7[%c0_6, %c0_7] : memref<128x128xf32, #tpu.memory_space<vmem>>, vector<128x128xf32>
    tpu.vector_store %arg7[%c0_6, %c0_7], %7 {strides = array<i32>} : memref<128x128xf32, #tpu.memory_space<vmem>>, vector<128x128xf32>,
    %c0_i32_8 = arith.constant 0 : i32
    %9 = arith.cmpi eq, %arg1, %c0_i32_8 : i32
    %10 = arith.extui %9 : i1 to i32
    %c0_i32_9 = arith.constant 0 : i32
    %11 = arith.cmpi ne, %10, %c0_i32_9 : i32
    scf.if %11 {
      %c0_10 = arith.constant 0 : index
      %c0_11 = arith.constant 0 : index
      %12 = vector.load %arg7[%c0_10, %c0_11] : memref<128x128xf32, #tpu.memory_space<vmem>>, vector<128x128xf32>
      %c0_12 = arith.constant 0 : index
      %c0_13 = arith.constant 0 : index
      %13 = vector.load %arg4[%c0_12, %c0_13] : memref<1x128xf32, #tpu.memory_space<vmem>>, vector<1x128xf32>
      %14 = vector.broadcast %13 : vector<1x128xf32> to vector<128x128xf32>
      %15 = arith.addf %12, %14 : vector<128x128xf32>
      %cst_14 = arith.constant 0.000000e+00 : f32
      %16 = vector.broadcast %cst_14 : f32 to vector<128x128xf32>
      %17 = arith.maximumf %15, %16 : vector<128x128xf32>
      %18 = arith.truncf %17 : vector<128x128xf32> to vector<128x128xbf16>
      %c0_15 = arith.constant 0 : index
      %c0_16 = arith.constant 0 : index
      %19 = vector.load %arg5[%c0_15, %c0_16] : memref<128x128xbf16, #tpu.memory_space<vmem>>, vector<128x128xbf16>
      %cst_17 = arith.constant dense<0.000000e+00> : vector<128x128xf32>
      %20 = tpu.matmul %18, %19, %cst_17 {dimension_numbers = #tpu.dot_dimension_numbers<[1], [0], [0], [1], [0, 0, 1, 1], [], []>} : vector<128x128xbf16>, vector<128x128xbf16>, vector<128x128xf32> -> vector<128x128xf32>
      %21 = arith.truncf %20 : vector<128x128xf32> to vector<128x128xbf16>
      %c0_18 = arith.constant 0 : index
      %c0_19 = arith.constant 0 : index
      %22 = vector.load %arg6[%c0_18, %c0_19] : memref<128x128xbf16, #tpu.memory_space<vmem>>, vector<128x128xbf16>
      tpu.vector_store %arg6[%c0_18, %c0_19], %21 {strides = array<i32>} : memref<128x128xbf16, #tpu.memory_space<vmem>>, vector<128x128xbf16>,
    } else {
    }
    return
  }
  func.func @transform_0(%arg0: i32, %arg1: i32) -> (i32, i32) {
    %c0_i32 = arith.constant 0 : i32
    return %arg0, %arg1 : i32, i32
  }
  func.func @transform_1(%arg0: i32, %arg1: i32) -> (i32, i32) {
    %c0_i32 = arith.constant 0 : i32
    %c0_i32_0 = arith.constant 0 : i32
    return %arg1, %c0_i32 : i32, i32
  }
  func.func @transform_2(%arg0: i32, %arg1: i32) -> (i32, i32) {
    %c0_i32 = arith.constant 0 : i32
    %c0_i32_0 = arith.constant 0 : i32
    %c0_i32_1 = arith.constant 0 : i32
    return %c0_i32, %c0_i32_0 : i32, i32
  }
  func.func @transform_3(%arg0: i32, %arg1: i32) -> (i32, i32) {
    %c0_i32 = arith.constant 0 : i32
    %c0_i32_0 = arith.constant 0 : i32
    %c0_i32_1 = arith.constant 0 : i32
    return %c0_i32, %c0_i32_0 : i32, i32
  }
  func.func @transform_4(%arg0: i32, %arg1: i32) -> (i32, i32) {
    %c0_i32 = arith.constant 0 : i32
    %c0_i32_0 = arith.constant 0 : i32
    return %arg0, %c0_i32 : i32, i32
  }
}

module attributes {stable_mosaic.version = 11 : i64} {
  func.func @gcn_layer2_kernel(%arg0: i32, %arg1: i32, %arg2: memref<128x128xbf16, #tpu.memory_space<vmem>>, %arg3: memref<128x128xbf16, #tpu.memory_space<vmem>>, %arg4: memref<1x128xf32, #tpu.memory_space<vmem>>, %arg5: memref<128x128xf32, #tpu.memory_space<vmem>>, %arg6: memref<128x128xf32, #tpu.memory_space<vmem>>) attributes {dimension_semantics = [#tpu.dimension_semantics<parallel>, #tpu.dimension_semantics<arbitrary>], iteration_bounds = array<i64: 1, 1>, scalar_prefetch = 0 : i64, scratch_operands = 1 : i64, tpu.core_type = #tpu.core_type<tc>, window_params = [{transform_indices = @transform_0, window_bounds = array<i64: 128, 128>}, {transform_indices = @transform_1, window_bounds = array<i64: 128, 128>}, {pipeline_mode = #tpu.pipeline_mode<synchronous>, transform_indices = @transform_2, window_bounds = array<i64: 1, 128>}, {transform_indices = @transform_3, window_bounds = array<i64: 128, 128>}]} {
    %c0_i32 = arith.constant 0 : i32
    %0 = arith.cmpi eq, %arg1, %c0_i32 : i32
    %1 = arith.extui %0 : i1 to i32
    %c0_i32_0 = arith.constant 0 : i32
    %2 = arith.cmpi ne, %1, %c0_i32_0 : i32
    scf.if %2 {
      %cst_10 = arith.constant 0.000000e+00 : f32
      %12 = vector.broadcast %cst_10 : f32 to vector<128x128xf32>
      %c0_11 = arith.constant 0 : index
      %c0_12 = arith.constant 0 : index
      %13 = vector.load %arg6[%c0_11, %c0_12] : memref<128x128xf32, #tpu.memory_space<vmem>>, vector<128x128xf32>
      tpu.vector_store %arg6[%c0_11, %c0_12], %12 {strides = array<i32>} : memref<128x128xf32, #tpu.memory_space<vmem>>, vector<128x128xf32>,
    } else {
    }
    %c0 = arith.constant 0 : index
    %c0_1 = arith.constant 0 : index
    %3 = vector.load %arg6[%c0, %c0_1] : memref<128x128xf32, #tpu.memory_space<vmem>>, vector<128x128xf32>
    %c0_2 = arith.constant 0 : index
    %c0_3 = arith.constant 0 : index
    %4 = vector.load %arg2[%c0_2, %c0_3] : memref<128x128xbf16, #tpu.memory_space<vmem>>, vector<128x128xbf16>
    %c0_4 = arith.constant 0 : index
    %c0_5 = arith.constant 0 : index
    %5 = vector.load %arg3[%c0_4, %c0_5] : memref<128x128xbf16, #tpu.memory_space<vmem>>, vector<128x128xbf16>
    %cst = arith.constant dense<0.000000e+00> : vector<128x128xf32>
    %6 = tpu.matmul %4, %5, %cst {dimension_numbers = #tpu.dot_dimension_numbers<[1], [0], [0], [1], [0, 0, 1, 1], [], []>} : vector<128x128xbf16>, vector<128x128xbf16>, vector<128x128xf32> -> vector<128x128xf32>
    %7 = arith.addf %3, %6 : vector<128x128xf32>
    %c0_6 = arith.constant 0 : index
    %c0_7 = arith.constant 0 : index
    %8 = vector.load %arg6[%c0_6, %c0_7] : memref<128x128xf32, #tpu.memory_space<vmem>>, vector<128x128xf32>
    tpu.vector_store %arg6[%c0_6, %c0_7], %7 {strides = array<i32>} : memref<128x128xf32, #tpu.memory_space<vmem>>, vector<128x128xf32>,
    %c0_i32_8 = arith.constant 0 : i32
    %9 = arith.cmpi eq, %arg1, %c0_i32_8 : i32
    %10 = arith.extui %9 : i1 to i32
    %c0_i32_9 = arith.constant 0 : i32
    %11 = arith.cmpi ne, %10, %c0_i32_9 : i32
    scf.if %11 {
      %c0_10 = arith.constant 0 : index
      %c0_11 = arith.constant 0 : index
      %12 = vector.load %arg6[%c0_10, %c0_11] : memref<128x128xf32, #tpu.memory_space<vmem>>, vector<128x128xf32>
      %c0_12 = arith.constant 0 : index
      %c0_13 = arith.constant 0 : index
      %13 = vector.load %arg4[%c0_12, %c0_13] : memref<1x128xf32, #tpu.memory_space<vmem>>, vector<1x128xf32>
      %14 = vector.broadcast %13 : vector<1x128xf32> to vector<128x128xf32>
      %15 = arith.addf %12, %14 : vector<128x128xf32>
      %16 = tpu.iota {dimensions = array<i32: 1>} : vector<128x128xi32>
      %c4_i32 = arith.constant 4 : i32
      %17 = vector.broadcast %c4_i32 : i32 to vector<128x128xi32>
      %18 = arith.cmpi slt, %16, %17 : vector<128x128xi32>
      %cst_14 = arith.constant -1.000000e+30 : f32
      %19 = vector.broadcast %cst_14 : f32 to vector<128x128xf32>
      %20 = arith.select %18, %15, %19 : vector<128x128xi1>, vector<128x128xf32>
      %cst_15 = arith.constant dense<0xFF800000> : vector<128xf32>
      %21 = vector.multi_reduction <maximumf>, %20, %cst_15 [1] : vector<128x128xf32> to vector<128xf32>
      %22 = vector.shape_cast %21 : vector<128xf32> to vector<128x1xf32>
      %23 = vector.broadcast %22 : vector<128x1xf32> to vector<128x128xf32>
      %24 = arith.subf %20, %23 : vector<128x128xf32>
      %25 = math.exp %24 : vector<128x128xf32>
      %cst_16 = arith.constant dense<0.000000e+00> : vector<128xf32>
      %26 = vector.multi_reduction <add>, %25, %cst_16 [1] : vector<128x128xf32> to vector<128xf32>
      %27 = vector.shape_cast %26 : vector<128xf32> to vector<128x1xf32>
      %28 = math.log %27 : vector<128x1xf32>
      %29 = vector.broadcast %28 : vector<128x1xf32> to vector<128x128xf32>
      %30 = arith.subf %24, %29 : vector<128x128xf32>
      %c0_17 = arith.constant 0 : index
      %c0_18 = arith.constant 0 : index
      %31 = vector.load %arg5[%c0_17, %c0_18] : memref<128x128xf32, #tpu.memory_space<vmem>>, vector<128x128xf32>
      tpu.vector_store %arg5[%c0_17, %c0_18], %30 {strides = array<i32>} : memref<128x128xf32, #tpu.memory_space<vmem>>, vector<128x128xf32>,
    } else {
    }
    return
  }
  func.func @transform_0(%arg0: i32, %arg1: i32) -> (i32, i32) {
    %c0_i32 = arith.constant 0 : i32
    return %arg0, %arg1 : i32, i32
  }
  func.func @transform_1(%arg0: i32, %arg1: i32) -> (i32, i32) {
    %c0_i32 = arith.constant 0 : i32
    %c0_i32_0 = arith.constant 0 : i32
    return %arg1, %c0_i32 : i32, i32
  }
  func.func @transform_2(%arg0: i32, %arg1: i32) -> (i32, i32) {
    %c0_i32 = arith.constant 0 : i32
    %c0_i32_0 = arith.constant 0 : i32
    %c0_i32_1 = arith.constant 0 : i32
    return %c0_i32, %c0_i32_0 : i32, i32
  }
  func.func @transform_3(%arg0: i32, %arg1: i32) -> (i32, i32) {
    %c0_i32 = arith.constant 0 : i32
    %c0_i32_0 = arith.constant 0 : i32
    return %arg0, %c0_i32 : i32, i32
  }
}

</mosaic_0001>

<bundles_post_ra>
// kernel: gcn_forward.3
= control target key start
LH: loop header
LB: loop body
LE: loop exit
PB: predicated region body
PF: predicated region fallthrough
CT: control target
= control target key end

     0   :  { %v350_v16 = vlaneseq  ;;  %s940_s1 = inlined_call_operand.vmem [shape: bf16[128,128], index: 1, kind: input, shape index: {}]   ;;  %s941_s0 = inlined_call_operand.vmem [shape: bf16[128,128], index: 0, kind: input, shape index: {}]   ;;  %s942_s2 = inlined_call_operand.vmem [shape: f32[1,128], index: 2, kind: input, shape index: {}]   ;;  %s943_s3 = inlined_call_operand.vmem [shape: f32[128,128], index: 3, kind: output, shape index: {}]  }
   0x1   :  { %v630_v0 = vld [vmem:[%s940_s1 + $0x38] sm:$0xff]   ;;  %v631_v1 = vld [vmem:[%s940_s1 + $0x30] sm:$0xff]   ;;  %v632_v2 = vld [vmem:[%s940_s1 + $0x28] sm:$0xff]  }
   0x2   :  { %582 = vmatprep.subr.bf16.mxu0 %v630_v0  ;;  %614 = vmatprep.subr.bf16.mxu1 %v630_v0  ;;  %v633_v3 = vld [vmem:[%s940_s1 + $0x20] sm:$0xff]   ;;  %v634_v6 = vld [vmem:[%s940_s1 + $0x18] sm:$0xff]   ;;  %v635_v7 = vld [vmem:[%s940_s1 + $0x10] sm:$0xff]   ;;  %v778_v17 = vand.u32 127, %v350_v16 }
   0x3   :  { %583 = vmatpush3.bf16.msra.mxu0 %v630_v0  ;;  %622 = vmatpush3.bf16.msra.mxu1 %v630_v0  ;;  %v638_v4 = vld [vmem:[%s941_s0] sm:$0xff]   ;;  %v636_v8 = vld [vmem:[%s940_s1 + $0x8] sm:$0xff]   ;;  %v642_v12 = vld [vmem:[%s941_s0 + $0x10] sm:$0xff]  }
   0x4   :  { %584 = vmatprep.subr.bf16.mxu0 %v631_v1  ;;  %615 = vmatprep.subr.bf16.mxu1 %v631_v1  ;;  %v639_v5 = vld [vmem:[%s941_s0 + $0x20] sm:$0xff]   ;;  %v640_v10 = vld [vmem:[%s941_s0 + $0x8] sm:$0xff]   ;;  %v644_v13 = vld [vmem:[%s941_s0 + $0x30] sm:$0xff]   ;;  %vm352_vm0 = vcmp.lt.s32.totalorder %v778_v17, 4 }
   0x5   :  { %598 = vmatprep.mubr.bf16.mxu0 %v638_v4  ;;  %606 = vmatprep.mubr.bf16.mxu1 %v639_v5  ;;  %v637_v9 = vld [vmem:[%s940_s1] sm:$0xff]   ;;  %v641_v11 = vld [vmem:[%s941_s0 + $0x28] sm:$0xff]   ;;  %v643_v14 = vld [vmem:[%s941_s0 + $0x18] sm:$0xff]  }
   0x6   :  { %v645_v15 = vld [vmem:[%s941_s0 + $0x38] sm:$0xff]   ;;  %v565_v18 = vld [vmem:[%s942_s2] ss:$0 sm:$0xff] }
   0x7   :  { %585 = vmatpush3.bf16.msra.mxu0 %v631_v1  ;;  %623 = vmatpush3.bf16.msra.mxu1 %v631_v1 }
   0x8   :  { %586 = vmatprep.subr.bf16.mxu0 %v632_v2  ;;  %616 = vmatprep.subr.bf16.mxu1 %v632_v2 }
   0xb   :  { %587 = vmatpush3.bf16.msra.mxu0 %v632_v2  ;;  %624 = vmatpush3.bf16.msra.mxu1 %v632_v2 }
   0xc   :  { %588 = vmatprep.subr.bf16.mxu0 %v633_v3  ;;  %617 = vmatprep.subr.bf16.mxu1 %v633_v3 }
   0xf   :  { %589 = vmatpush3.bf16.msra.mxu0 %v633_v3  ;;  %625 = vmatpush3.bf16.msra.mxu1 %v633_v3 }
  0x10   :  { %590 = vmatprep.subr.bf16.mxu0 %v634_v6  ;;  %618 = vmatprep.subr.bf16.mxu1 %v634_v6 }
  0x13   :  { %591 = vmatpush3.bf16.msra.mxu0 %v634_v6  ;;  %626 = vmatpush3.bf16.msra.mxu1 %v634_v6 }
  0x14   :  { %592 = vmatprep.subr.bf16.mxu0 %v635_v7  ;;  %619 = vmatprep.subr.bf16.mxu1 %v635_v7 }
  0x17   :  { %593 = vmatpush3.bf16.msra.mxu0 %v635_v7  ;;  %627 = vmatpush3.bf16.msra.mxu1 %v635_v7 }
  0x18   :  { %594 = vmatprep.subr.bf16.mxu0 %v636_v8  ;;  %620 = vmatprep.subr.bf16.mxu1 %v636_v8 }
  0x1b   :  { %595 = vmatpush3.bf16.msra.mxu0 %v636_v8  ;;  %628 = vmatpush3.bf16.msra.mxu1 %v636_v8 }
  0x1c   :  { %596 = vmatprep.subr.bf16.mxu0 %v637_v9  ;;  %621 = vmatprep.subr.bf16.mxu1 %v637_v9 }
  0x1f   :  { %597 = vmatpush3.bf16.msra.mxu0 %v637_v9  ;;  %629 = vmatpush3.bf16.msra.mxu1 %v637_v9 }
  0x22   :  { %599 = vmatmul.mubr.bf16.vlgmr.msra.gmra.mxu0 %v640_v10  ;;  %607 = vmatmul.mubr.bf16.vlgmr.msra.gmra.mxu1 %v641_v11 }
  0x23   :  { %602 = vmatprep.mubr.bf16.mxu0 %v642_v12  ;;  %610 = vmatprep.mubr.bf16.mxu1 %v644_v13 }
  0x2a   :  { %603 = vmatmul.mubr.bf16.gmra.mxu0 %v643_v14  ;;  %611 = vmatmul.mubr.bf16.gmra.mxu1 %v645_v15 }
  0xe2   :  { %v600_v19 = vpop.f32.mrf.mxu0  ;;  %v608_v20 = vpop.f32.mrf.mxu1 }
  0xe3   :  { %v336_v21 = vadd.f32 %v600_v19, %v565_v18  ;;  %v344_v22 = vadd.f32 %v608_v20, %v565_v18 }
  0xe4   :  { %v213_v23 = vpop.f32.mrf.mxu0  ;;  %v245_v24 = vpop.f32.mrf.mxu1 }
  0xe5   :  { %v334_v25 = vadd.f32 %v565_v18, %v213_v23  ;;  %v363_v26 = vsel %vm352_vm0, %v344_v22, -1e+30  ;;  %v355_v27 = vsel %vm352_vm0, %v336_v21, -1e+30  ;;  %v342_v33 = vadd.f32 %v565_v18, %v245_v24 }
  0xe6   :  { %389 = vmax.xlane.f32.xlu0 %v363_v26  ;;  %v609_v28 = vpop.f32.mrf.mxu1  ;;  %373 = vmax.xlane.f32.xlu1 %v355_v27  ;;  %v601_v29 = vpop.f32.mrf.mxu0 }
  0xe7   :  { %v337_v30 = vadd.f32 %v601_v29, %v565_v18  ;;  %v345_v34 = vadd.f32 %v609_v28, %v565_v18  ;;  %v353_v35 = vsel %vm352_vm0, %v334_v25, -1e+30  ;;  %v361_v42 = vsel %vm352_vm0, %v342_v33, -1e+30 }
  0xe8   :  { %v216_v31 = vpop.f32.mrf.mxu0  ;;  %v248_v32 = vpop.f32.mrf.mxu1 }
  0xe9   :  { %v356_v36 = vsel %vm352_vm0, %v337_v30, -1e+30  ;;  %v335_v40 = vadd.f32 %v565_v18, %v216_v31  ;;  %v343_v41 = vadd.f32 %v565_v18, %v248_v32  ;;  %v364_v43 = vsel %vm352_vm0, %v345_v34, -1e+30 }
  0xea   :  { %369 = vmax.xlane.f32.xlu0 %v353_v35  ;;  %375 = vmax.xlane.f32.xlu1 %v356_v36  ;;  %v604_v37 = vpop.f32.mrf.mxu0  ;;  %v612_v38 = vpop.f32.mrf.mxu1 }
  0xeb   :  { %v340_v46 = vadd.f32 %v604_v37, %v565_v18  ;;  %v362_v48 = vsel %vm352_vm0, %v343_v41, -1e+30  ;;  %v354_v49 = vsel %vm352_vm0, %v335_v40, -1e+30  ;;  %v348_v61 = vadd.f32 %v612_v38, %v565_v18 }
  0xec   :  { %v229_v39 = vpop.f32.mrf.mxu0  ;;  %v261_v45 = vpop.f32.mrf.mxu1 }
  0xed   :  { %v359_v52 = vsel %vm352_vm0, %v340_v46, -1e+30  ;;  %v338_v54 = vadd.f32 %v565_v18, %v229_v39  ;;  %v346_v57 = vadd.f32 %v565_v18, %v261_v45  ;;  %v817_v1 = vsel %vm352_vm0, %v348_v61, -1e+30 }
  0xee   :  { %385 = vmax.xlane.f32.xlu0 %v361_v42  ;;  %391 = vmax.xlane.f32.xlu1 %v364_v43  ;;  %v605_v44 = vpop.f32.mrf.mxu0  ;;  %v613_v51 = vpop.f32.mrf.mxu1 }
  0xef   :  { %v341_v47 = vadd.f32 %v605_v44, %v565_v18  ;;  %v357_v59 = vsel %vm352_vm0, %v338_v54, -1e+30  ;;  %v349_v62 = vadd.f32 %v613_v51, %v565_v18  ;;  %v365_v63 = vsel %vm352_vm0, %v346_v57, -1e+30 }
  0xf0   :  { %v232_v50 = vpop.f32.mrf.mxu0  ;;  %v264_v56 = vpop.f32.mrf.mxu1 }
  0xf1   :  { %v360_v53 = vsel %vm352_vm0, %v341_v47, -1e+30  ;;  %v339_v55 = vadd.f32 %v565_v18, %v232_v50  ;;  %v347_v58 = vadd.f32 %v565_v18, %v264_v56  ;;  %v821_v2 = vsel %vm352_vm0, %v349_v62, -1e+30 }
  0xf2   :  { %387 = vmax.xlane.f32.xlu1 %v362_v48  ;;  %371 = vmax.xlane.f32.xlu0 %v354_v49 }
  0xf3   :  { %v358_v60 = vsel %vm352_vm0, %v339_v55, -1e+30  ;;  %v812_v0 = vsel %vm352_vm0, %v347_v58, -1e+30 }
  0xf6   :  { %381 = vmax.xlane.f32.xlu0 %v359_v52  ;;  %383 = vmax.xlane.f32.xlu1 %v360_v53 }
  0xfa   :  { %377 = vmax.xlane.f32.xlu0 %v357_v59  ;;  %379 = vmax.xlane.f32.xlu1 %v358_v60 }
  0xfe   :  { %393 = vmax.xlane.f32.xlu0 %v365_v63  ;;  %395 = vmax.xlane.f32.xlu1 %v812_v0 }
 0x102   :  { %397 = vmax.xlane.f32.xlu0 %v817_v1  ;;  %399 = vmax.xlane.f32.xlu1 %v821_v2 }
 0x16f   :  { %v390_v3 = vpop.xlane.xlu0 %389  ;;  %v374_v4 = vpop.xlane.xlu1 %373 }
 0x170   :  { %v825_v5 = vsub.f32 %v363_v26, %v390_v3  ;;  %v827_v6 = vsub.f32 %v355_v27, %v374_v4 }
 0x172   :  { %v421_v7 = vmul.f32 1.442695, %v827_v6  ;;  %v437_v10 = vmul.f32 1.442695, %v825_v5 }
 0x173   :  { %v370_v8 = vpop.xlane.xlu0 %369  ;;  %v376_v9 = vpop.xlane.xlu1 %375 }
 0x174   :  { %v831_v11 = vsub.f32 %v353_v35, %v370_v8  ;;  %v833_v12 = vsub.f32 %v356_v36, %v376_v9  ;;  %646 = vpow2.f32 %v421_v7 }
 0x175   :  { %648 = vpow2.f32 %v437_v10 }
 0x176   :  { %v423_v13 = vmul.f32 1.442695, %v833_v12  ;;  %v417_v16 = vmul.f32 1.442695, %v831_v11 }
 0x177   :  { %v386_v14 = vpop.xlane.xlu0 %385  ;;  %v392_v15 = vpop.xlane.xlu1 %391 }
 0x178   :  { %v837_v17 = vsub.f32 %v361_v42, %v386_v14  ;;  %v839_v18 = vsub.f32 %v364_v43, %v392_v15  ;;  %650 = vpow2.f32 %v423_v13 }
 0x179   :  { %652 = vpow2.f32 %v417_v16 }
 0x17a   :  { %v439_v19 = vmul.f32 1.442695, %v839_v18  ;;  %v433_v22 = vmul.f32 1.442695, %v837_v17 }
 0x17b   :  { %v388_v20 = vpop.xlane.xlu1 %387  ;;  %v372_v21 = vpop.xlane.xlu0 %371 }
 0x17c   :  { %v843_v23 = vsub.f32 %v354_v49, %v372_v21  ;;  %654 = vpow2.f32 %v439_v19  ;;  %v845_v24 = vsub.f32 %v362_v48, %v388_v20 }
 0x17d   :  { %656 = vpow2.f32 %v433_v22 }
 0x17e   :  { %v419_v25 = vmul.f32 1.442695, %v843_v23  ;;  %v435_v29 = vmul.f32 1.442695, %v845_v24 }
 0x17f   :  { %v382_v26 = vpop.xlane.xlu0 %381  ;;  %v384_v27 = vpop.xlane.xlu1 %383 }
 0x180   :  { %v848_v28 = vsub.f32 %v359_v52, %v382_v26  ;;  %658 = vpow2.f32 %v419_v25  ;;  %v851_v30 = vsub.f32 %v360_v53, %v384_v27 }
 0x181   :  { %v647_v31 = vpop.eup %646 }
 0x182   :  { %v429_v32 = vmul.f32 1.442695, %v848_v28  ;;  %453 = vadd.xlane.f32.xlu0 %v647_v31  ;;  %v649_v36 = vpop.eup %648  ;;  %v431_v37 = vmul.f32 1.442695, %v851_v30 }
 0x183   :  { %v378_v33 = vpop.xlane.xlu0 %377  ;;  %v380_v34 = vpop.xlane.xlu1 %379 }
 0x184   :  { %660 = vpow2.f32 %v429_v32  ;;  %v854_v35 = vsub.f32 %v357_v59, %v378_v33  ;;  %v857_v38 = vsub.f32 %v358_v60, %v380_v34 }
 0x185   :  { %662 = vpow2.f32 %v435_v29  ;;  %v651_v39 = vpop.eup %650 }
 0x186   :  { %v425_v40 = vmul.f32 1.442695, %v854_v35  ;;  %469 = vadd.xlane.f32.xlu0 %v649_v36  ;;  %455 = vadd.xlane.f32.xlu1 %v651_v39  ;;  %v653_v44 = vpop.eup %652  ;;  %v427_v45 = vmul.f32 1.442695, %v857_v38 }
 0x187   :  { %v394_v41 = vpop.xlane.xlu0 %393  ;;  %v396_v42 = vpop.xlane.xlu1 %395 }
 0x188   :  { %664 = vpow2.f32 %v425_v40  ;;  %v860_v43 = vsub.f32 %v365_v63, %v394_v41  ;;  %v864_v46 = vsub.f32 %v812_v0, %v396_v42 }
 0x189   :  { %666 = vpow2.f32 %v431_v37  ;;  %v655_v47 = vpop.eup %654 }
 0x18a   :  { %v441_v48 = vmul.f32 1.442695, %v860_v43  ;;  %449 = vadd.xlane.f32.xlu0 %v653_v44  ;;  %471 = vadd.xlane.f32.xlu1 %v655_v47  ;;  %v657_v52 = vpop.eup %656  ;;  %v443_v53 = vmul.f32 1.442695, %v864_v46 }
 0x18b   :  { %v398_v49 = vpop.xlane.xlu0 %397  ;;  %v400_v50 = vpop.xlane.xlu1 %399 }
 0x18c   :  { %668 = vpow2.f32 %v441_v48  ;;  %v868_v51 = vsub.f32 %v817_v1, %v398_v49  ;;  %v872_v54 = vsub.f32 %v821_v2, %v400_v50 }
 0x18d   :  { %670 = vpow2.f32 %v427_v45  ;;  %v659_v55 = vpop.eup %658 }
 0x18e   :  { %v445_v56 = vmul.f32 1.442695, %v868_v51  ;;  %465 = vadd.xlane.f32.xlu0 %v657_v52  ;;  %451 = vadd.xlane.f32.xlu1 %v659_v55  ;;  %v447_v58 = vmul.f32 1.442695, %v872_v54 }
 0x190   :  { %672 = vpow2.f32 %v445_v56 }
 0x191   :  { %v661_v57 = vpop.eup %660  ;;  %674 = vpow2.f32 %v443_v53 }
 0x192   :  { %v663_v59 = vpop.eup %662  ;;  %461 = vadd.xlane.f32.xlu0 %v661_v57  ;;  %676 = vpow2.f32 %v447_v58 }
 0x193   :  { %467 = vadd.xlane.f32.xlu1 %v663_v59 }
 0x195   :  { %v665_v60 = vpop.eup %664 }
 0x196   :  { %v667_v61 = vpop.eup %666  ;;  %457 = vadd.xlane.f32.xlu0 %v665_v60 }
 0x197   :  { %463 = vadd.xlane.f32.xlu1 %v667_v61 }
 0x199   :  { %v669_v62 = vpop.eup %668 }
 0x19a   :  { %v671_v63 = vpop.eup %670  ;;  %473 = vadd.xlane.f32.xlu0 %v669_v62 }
 0x19b   :  { %459 = vadd.xlane.f32.xlu1 %v671_v63 }
 0x19d   :  { %v673_v0 = vpop.eup %672 }
 0x19e   :  { %v675_v1 = vpop.eup %674  ;;  %477 = vadd.xlane.f32.xlu0 %v673_v0 }
 0x19f   :  { %475 = vadd.xlane.f32.xlu1 %v675_v1  ;;  %v677_v2 = vpop.eup %676 }
 0x1a3   :  { %479 = vadd.xlane.f32.xlu1 %v677_v2 }
 0x20b   :  { %v454_v3 = vpop.xlane.xlu0 %453 }
 0x20c   :  { %678 = vlog2.f32 %v454_v3 }
 0x20f   :  { %v470_v4 = vpop.xlane.xlu0 %469  ;;  %v456_v7 = vpop.xlane.xlu1 %455 }
 0x210   :  { %680 = vlog2.f32 %v470_v4 }
 0x211   :  { %682 = vlog2.f32 %v456_v7 }
 0x213   :  { %v450_v8 = vpop.xlane.xlu0 %449  ;;  %v472_v9 = vpop.xlane.xlu1 %471 }
 0x214   :  { %684 = vlog2.f32 %v450_v8 }
 0x215   :  { %686 = vlog2.f32 %v472_v9 }
 0x217   :  { %v466_v10 = vpop.xlane.xlu0 %465  ;;  %v452_v13 = vpop.xlane.xlu1 %451 }
 0x218   :  { %688 = vlog2.f32 %v466_v10 }
 0x219   :  { %v679_v14 = vpop.eup %678  ;;  %690 = vlog2.f32 %v452_v13 }
 0x21a   :  { %v486_v15 = vmul.f32 0.6931472, %v679_v14 }
 0x21b   :  { %v462_v16 = vpop.xlane.xlu0 %461 }
 0x21c   :  { %v468_v19 = vpop.xlane.xlu1 %467  ;;  %v515_v20 = vsub.f32 %v827_v6, %v486_v15  ;;  %692 = vlog2.f32 %v462_v16 }
 0x21d   :  { %v681_v21 = vpop.eup %680  ;;  %694 = vlog2.f32 %v468_v19 }
 0x21e   :  { %v683_v22 = vpop.eup %682  ;;  %531 = vst [vmem:[%s943_s3 + $0x10] sm:$0xff] %v515_v20  ;;  %v502_v25 = vmul.f32 0.6931472, %v681_v21 }
 0x21f   :  { %v488_v26 = vmul.f32 0.6931472, %v683_v22  ;;  %v458_v27 = vpop.xlane.xlu0 %457 }
 0x220   :  { %v464_v29 = vpop.xlane.xlu1 %463  ;;  %v523_v31 = vsub.f32 %v825_v5, %v502_v25  ;;  %696 = vlog2.f32 %v458_v27 }
 0x221   :  { %v685_v32 = vpop.eup %684  ;;  %v516_v33 = vsub.f32 %v833_v12, %v488_v26  ;;  %698 = vlog2.f32 %v464_v29 }
 0x222   :  { %v687_v6 = vpop.eup %686  ;;  %539 = vst [vmem:[%s943_s3 + $0x50] sm:$0xff] %v523_v31  ;;  %v482_v34 = vmul.f32 0.6931472, %v685_v32 }
 0x223   :  { %532 = vst [vmem:[%s943_s3 + $0x18] sm:$0xff] %v516_v33  ;;  %v504_v36 = vmul.f32 0.6931472, %v687_v6  ;;  %v474_v37 = vpop.xlane.xlu0 %473 }
 0x224   :  { %v460_v39 = vpop.xlane.xlu1 %459  ;;  %v513_v5 = vsub.f32 %v831_v11, %v482_v34  ;;  %700 = vlog2.f32 %v474_v37 }
 0x225   :  { %v689_v40 = vpop.eup %688  ;;  %v524_v12 = vsub.f32 %v839_v18, %v504_v36  ;;  %702 = vlog2.f32 %v460_v39 }
 0x226   :  { %v691_v41 = vpop.eup %690  ;;  %529 = vst [vmem:[%s943_s3] sm:$0xff] %v513_v5  ;;  %v498_v42 = vmul.f32 0.6931472, %v689_v40 }
 0x227   :  { %540 = vst [vmem:[%s943_s3 + $0x58] sm:$0xff] %v524_v12  ;;  %v484_v44 = vmul.f32 0.6931472, %v691_v41  ;;  %v478_v45 = vpop.xlane.xlu0 %477 }
 0x228   :  { %v476_v47 = vpop.xlane.xlu1 %475  ;;  %v521_v11 = vsub.f32 %v837_v17, %v498_v42  ;;  %704 = vlog2.f32 %v478_v45 }
 0x229   :  { %v693_v48 = vpop.eup %692  ;;  %v514_v18 = vsub.f32 %v843_v23, %v484_v44  ;;  %706 = vlog2.f32 %v476_v47 }
 0x22a   :  { %v695_v49 = vpop.eup %694  ;;  %537 = vst [vmem:[%s943_s3 + $0x40] sm:$0xff] %v521_v11  ;;  %v494_v50 = vmul.f32 0.6931472, %v693_v48 }
 0x22b   :  { %530 = vst [vmem:[%s943_s3 + $0x8] sm:$0xff] %v514_v18  ;;  %v500_v52 = vmul.f32 0.6931472, %v695_v49 }
 0x22c   :  { %v480_v53 = vpop.xlane.xlu1 %479  ;;  %v519_v55 = vsub.f32 %v848_v28, %v494_v50 }
 0x22d   :  { %708 = vlog2.f32 %v480_v53  ;;  %v697_v17 = vpop.eup %696  ;;  %v522_v56 = vsub.f32 %v845_v24, %v500_v52 }
 0x22e   :  { %v699_v23 = vpop.eup %698  ;;  %535 = vst [vmem:[%s943_s3 + $0x30] sm:$0xff] %v519_v55  ;;  %v490_v57 = vmul.f32 0.6931472, %v697_v17 }
 0x22f   :  { %538 = vst [vmem:[%s943_s3 + $0x48] sm:$0xff] %v522_v56  ;;  %v496_v58 = vmul.f32 0.6931472, %v699_v23 }
 0x230   :  { %v517_v59 = vsub.f32 %v854_v35, %v490_v57 }
 0x231   :  { %v701_v60 = vpop.eup %700  ;;  %v520_v28 = vsub.f32 %v851_v30, %v496_v58 }
 0x232   :  { %v703_v61 = vpop.eup %702  ;;  %533 = vst [vmem:[%s943_s3 + $0x20] sm:$0xff] %v517_v59  ;;  %v506_v24 = vmul.f32 0.6931472, %v701_v60 }
 0x233   :  { %536 = vst [vmem:[%s943_s3 + $0x38] sm:$0xff] %v520_v28  ;;  %v492_v62 = vmul.f32 0.6931472, %v703_v61 }
 0x234   :  { %v525_v63 = vsub.f32 %v860_v43, %v506_v24 }
 0x235   :  { %v705_v0 = vpop.eup %704  ;;  %v518_v1 = vsub.f32 %v857_v38, %v492_v62 }
 0x236   :  { %v707_v35 = vpop.eup %706  ;;  %541 = vst [vmem:[%s943_s3 + $0x60] sm:$0xff] %v525_v63  ;;  %v510_v30 = vmul.f32 0.6931472, %v705_v0 }
 0x237   :  { %534 = vst [vmem:[%s943_s3 + $0x28] sm:$0xff] %v518_v1  ;;  %v508_v2 = vmul.f32 0.6931472, %v707_v35 }
 0x238   :  { %v527_v3 = vsub.f32 %v868_v51, %v510_v30 }
 0x239   :  { %v526_v7 = vsub.f32 %v864_v46, %v508_v2 }
 0x23a   :  { %v709_v4 = vpop.eup %708  ;;  %543 = vst [vmem:[%s943_s3 + $0x70] sm:$0xff] %v527_v3 }
 0x23b   :  { %v512_v38 = vmul.f32 0.6931472, %v709_v4  ;;  %542 = vst [vmem:[%s943_s3 + $0x68] sm:$0xff] %v526_v7 }
 0x23d   :  { %v528_v43 = vsub.f32 %v872_v54, %v512_v38 }
 0x23f   :  { %544 = vst [vmem:[%s943_s3 + $0x78] sm:$0xff] %v528_v43 }

// kernel: gcn_forward.2
= control target key start
LH: loop header
LB: loop body
LE: loop exit
PB: predicated region body
PF: predicated region fallthrough
CT: control target
= control target key end

     0   :  { %s970_s1 = inlined_call_operand.vmem [shape: bf16[128,128], index: 1, kind: input, shape index: {}]   ;;  %s971_s0 = inlined_call_operand.vmem [shape: bf16[128,128], index: 0, kind: input, shape index: {}]   ;;  %s972_s3 = inlined_call_operand.vmem [shape: bf16[128,128], index: 3, kind: input, shape index: {}]   ;;  %s973_s2 = inlined_call_operand.vmem [shape: f32[1,128], index: 2, kind: input, shape index: {}]   ;;  %s974_s4 = inlined_call_operand.vmem [shape: bf16[128,128], index: 4, kind: output, shape index: {}]  }
   0x1   :  { %v822_v0 = vld [vmem:[%s970_s1 + $0x38] sm:$0xff]   ;;  %v823_v1 = vld [vmem:[%s970_s1 + $0x30] sm:$0xff]   ;;  %v824_v2 = vld [vmem:[%s970_s1 + $0x28] sm:$0xff]  }
   0x2   :  { %758 = vmatprep.subr.bf16.mxu0 %v822_v0  ;;  %v825_v3 = vld [vmem:[%s970_s1 + $0x20] sm:$0xff]   ;;  %v826_v5 = vld [vmem:[%s970_s1 + $0x18] sm:$0xff]   ;;  %v827_v6 = vld [vmem:[%s970_s1 + $0x10] sm:$0xff]  }
   0x3   :  { %759 = vmatpush3.bf16.msra.mxu0 %v822_v0  ;;  %v830_v4 = vld [vmem:[%s971_s0] sm:$0xff]   ;;  %v838_v7 = vld [vmem:[%s972_s3 + $0x38] sm:$0xff]   ;;  %v839_v8 = vld [vmem:[%s972_s3 + $0x30] sm:$0xff]  }
   0x4   :  { %760 = vmatprep.subr.bf16.mxu0 %v823_v1  ;;  %774 = vmatprep.mubr.bf16.mxu0 %v830_v4  ;;  %v828_v9 = vld [vmem:[%s970_s1 + $0x8] sm:$0xff]   ;;  %v829_v11 = vld [vmem:[%s970_s1] sm:$0xff]   ;;  %v842_v13 = vld [vmem:[%s972_s3 + $0x18] sm:$0xff]  }
   0x5   :  { %790 = vmatprep.subr.bf16.mxu1 %v838_v7  ;;  %v840_v10 = vld [vmem:[%s972_s3 + $0x28] sm:$0xff]   ;;  %v841_v12 = vld [vmem:[%s972_s3 + $0x20] sm:$0xff]   ;;  %v832_v15 = vld [vmem:[%s971_s0 + $0x10] sm:$0xff]  }
   0x6   :  { %791 = vmatpush3.bf16.msra.mxu1 %v838_v7  ;;  %v831_v14 = vld [vmem:[%s971_s0 + $0x8] sm:$0xff]   ;;  %v833_v16 = vld [vmem:[%s971_s0 + $0x18] sm:$0xff]   ;;  %v834_v17 = vld [vmem:[%s971_s0 + $0x20] sm:$0xff]  }
   0x7   :  { %761 = vmatpush3.bf16.msra.mxu0 %v823_v1  ;;  %792 = vmatprep.subr.bf16.mxu1 %v839_v8  ;;  %v835_v18 = vld [vmem:[%s971_s0 + $0x28] sm:$0xff]   ;;  %v836_v19 = vld [vmem:[%s971_s0 + $0x30] sm:$0xff]   ;;  %v837_v20 = vld [vmem:[%s971_s0 + $0x38] sm:$0xff]  }
   0x8   :  { %762 = vmatprep.subr.bf16.mxu0 %v824_v2  ;;  %v843_v21 = vld [vmem:[%s972_s3 + $0x10] sm:$0xff]   ;;  %v844_v22 = vld [vmem:[%s972_s3 + $0x8] sm:$0xff]   ;;  %v845_v23 = vld [vmem:[%s972_s3] sm:$0xff]  }
   0x9   :  { %v638_v26 = vld [vmem:[%s973_s2] ss:$0 sm:$0xff] }
   0xa   :  { %793 = vmatpush3.bf16.msra.mxu1 %v839_v8 }
   0xb   :  { %763 = vmatpush3.bf16.msra.mxu0 %v824_v2  ;;  %794 = vmatprep.subr.bf16.mxu1 %v840_v10 }
   0xc   :  { %764 = vmatprep.subr.bf16.mxu0 %v825_v3 }
   0xe   :  { %795 = vmatpush3.bf16.msra.mxu1 %v840_v10 }
   0xf   :  { %765 = vmatpush3.bf16.msra.mxu0 %v825_v3  ;;  %796 = vmatprep.subr.bf16.mxu1 %v841_v12 }
  0x10   :  { %766 = vmatprep.subr.bf16.mxu0 %v826_v5 }
  0x12   :  { %797 = vmatpush3.bf16.msra.mxu1 %v841_v12 }
  0x13   :  { %767 = vmatpush3.bf16.msra.mxu0 %v826_v5  ;;  %798 = vmatprep.subr.bf16.mxu1 %v842_v13 }
  0x14   :  { %768 = vmatprep.subr.bf16.mxu0 %v827_v6 }
  0x16   :  { %799 = vmatpush3.bf16.msra.mxu1 %v842_v13 }
  0x17   :  { %769 = vmatpush3.bf16.msra.mxu0 %v827_v6  ;;  %800 = vmatprep.subr.bf16.mxu1 %v843_v21 }
  0x18   :  { %770 = vmatprep.subr.bf16.mxu0 %v828_v9 }
  0x1a   :  { %801 = vmatpush3.bf16.msra.mxu1 %v843_v21 }
  0x1b   :  { %771 = vmatpush3.bf16.msra.mxu0 %v828_v9  ;;  %802 = vmatprep.subr.bf16.mxu1 %v844_v22 }
  0x1c   :  { %772 = vmatprep.subr.bf16.mxu0 %v829_v11 }
  0x1e   :  { %803 = vmatpush3.bf16.msra.mxu1 %v844_v22 }
  0x1f   :  { %773 = vmatpush3.bf16.msra.mxu0 %v829_v11  ;;  %804 = vmatprep.subr.bf16.mxu1 %v845_v23 }
  0x22   :  { %775 = vmatmul.mubr.bf16.vlgmr.msra.gmra.mxu0 %v831_v14  ;;  %805 = vmatpush3.bf16.msra.mxu1 %v845_v23 }
  0x23   :  { %778 = vmatprep.mubr.bf16.mxu0 %v832_v15 }
  0x2a   :  { %779 = vmatmul.mubr.bf16.gmra.mxu0 %v833_v16 }
  0x2b   :  { %782 = vmatprep.mubr.bf16.mxu0 %v834_v17 }
  0x32   :  { %783 = vmatmul.mubr.bf16.gmra.mxu0 %v835_v18 }
  0x33   :  { %786 = vmatprep.mubr.bf16.mxu0 %v836_v19 }
  0x3a   :  { %787 = vmatmul.mubr.bf16.gmra.mxu0 %v837_v20 }
  0xe2   :  { %v776_v24 = vpop.f32.mrf.mxu0 }
  0xe3   :  { %v339_v30 = vadd.f32 %v776_v24, %v638_v26 }
  0xe4   :  { %v216_v25 = vpop.f32.mrf.mxu0 }
  0xe5   :  { %v337_v28 = vadd.f32 %v638_v26, %v216_v25  ;;  %v355_v37 = vmax.f32 %v339_v30, 0.0 }
  0xe6   :  { %v777_v27 = vpop.f32.mrf.mxu0 }
  0xe7   :  { %v340_v29 = vadd.f32 %v777_v27, %v638_v26  ;;  %v353_v35 = vmax.f32 %v337_v28, 0.0 }
  0xe8   :  { %v219_v31 = vpop.f32.mrf.mxu0 }
  0xe9   :  { %v338_v32 = vadd.f32 %v638_v26, %v219_v31  ;;  %v356_v33 = vmax.f32 %v340_v29, 0.0 }
  0xea   :  { %v780_v34 = vpop.f32.mrf.mxu0 }
  0xeb   :  { %v354_v36 = vmax.f32 %v338_v32, 0.0  ;;  %v370_v40 = vpack.c.bf16 %v356_v33, %v355_v37  ;;  %v343_v44 = vadd.f32 %v780_v34, %v638_v26 }
  0xec   :  { %v232_v38 = vpop.f32.mrf.mxu0 }
  0xed   :  { %v369_v39 = vpack.c.bf16 %v354_v36, %v353_v35  ;;  %v341_v42 = vadd.f32 %v638_v26, %v232_v38  ;;  %v359_v51 = vmax.f32 %v343_v44, 0.0 }
  0xee   :  { %v781_v41 = vpop.f32.mrf.mxu0 }
  0xef   :  { %v344_v43 = vadd.f32 %v781_v41, %v638_v26  ;;  %806 = vmatprep.mubr.bf16.mxu1 %v369_v39  ;;  %v357_v49 = vmax.f32 %v341_v42, 0.0 }
  0xf0   :  { %v235_v45 = vpop.f32.mrf.mxu0  ;;  %807 = vmatmul.mubr.bf16.vlgmr.msra.gmra.mxu1 %v370_v40 }
  0xf1   :  { %v342_v46 = vadd.f32 %v638_v26, %v235_v45  ;;  %v360_v47 = vmax.f32 %v344_v43, 0.0 }
  0xf2   :  { %v784_v48 = vpop.f32.mrf.mxu0 }
  0xf3   :  { %v358_v50 = vmax.f32 %v342_v46, 0.0  ;;  %v372_v54 = vpack.c.bf16 %v360_v47, %v359_v51  ;;  %v347_v58 = vadd.f32 %v784_v48, %v638_v26 }
  0xf4   :  { %v248_v52 = vpop.f32.mrf.mxu0 }
  0xf5   :  { %v371_v53 = vpack.c.bf16 %v358_v50, %v357_v49  ;;  %v345_v56 = vadd.f32 %v638_v26, %v248_v52  ;;  %v363_v1 = vmax.f32 %v347_v58, 0.0 }
  0xf6   :  { %v785_v55 = vpop.f32.mrf.mxu0 }
  0xf7   :  { %v348_v57 = vadd.f32 %v785_v55, %v638_v26  ;;  %810 = vmatprep.mubr.bf16.mxu1 %v371_v53  ;;  %v361_v63 = vmax.f32 %v345_v56, 0.0 }
  0xf8   :  { %v251_v59 = vpop.f32.mrf.mxu0  ;;  %811 = vmatmul.mubr.bf16.gmra.mxu1 %v372_v54 }
  0xf9   :  { %v346_v60 = vadd.f32 %v638_v26, %v251_v59  ;;  %v364_v61 = vmax.f32 %v348_v57, 0.0 }
  0xfa   :  { %v788_v62 = vpop.f32.mrf.mxu0 }
  0xfb   :  { %v362_v0 = vmax.f32 %v346_v60, 0.0  ;;  %v374_v4 = vpack.c.bf16 %v364_v61, %v363_v1  ;;  %v351_v8 = vadd.f32 %v788_v62, %v638_v26 }
  0xfc   :  { %v264_v2 = vpop.f32.mrf.mxu0 }
  0xfd   :  { %v373_v3 = vpack.c.bf16 %v362_v0, %v361_v63  ;;  %v349_v6 = vadd.f32 %v638_v26, %v264_v2  ;;  %v367_v14 = vmax.f32 %v351_v8, 0.0 }
  0xfe   :  { %v789_v5 = vpop.f32.mrf.mxu0 }
  0xff   :  { %v352_v7 = vadd.f32 %v789_v5, %v638_v26  ;;  %814 = vmatprep.mubr.bf16.mxu1 %v373_v3  ;;  %v365_v12 = vmax.f32 %v349_v6, 0.0 }
 0x100   :  { %v267_v9 = vpop.f32.mrf.mxu0  ;;  %815 = vmatmul.mubr.bf16.gmra.mxu1 %v374_v4 }
 0x101   :  { %v350_v10 = vadd.f32 %v638_v26, %v267_v9  ;;  %v368_v11 = vmax.f32 %v352_v7, 0.0 }
 0x103   :  { %v366_v13 = vmax.f32 %v350_v10, 0.0  ;;  %v376_v16 = vpack.c.bf16 %v368_v11, %v367_v14 }
 0x105   :  { %v375_v15 = vpack.c.bf16 %v366_v13, %v365_v12 }
 0x107   :  { %818 = vmatprep.mubr.bf16.mxu1 %v375_v15 }
 0x108   :  { %819 = vmatmul.mubr.bf16.gmra.mxu1 %v376_v16 }
 0x1b0   :  { %v808_v17 = vpop.f32.mrf.mxu1 }
 0x1b2   :  { %v475_v18 = vpop.f32.mrf.mxu1 }
 0x1b4   :  { %v809_v19 = vpop.f32.mrf.mxu1 }
 0x1b5   :  { %v687_v20 = vpack.c.bf16 %v809_v19, %v808_v17 }
 0x1b6   :  { %v478_v21 = vpop.f32.mrf.mxu1 }
 0x1b7   :  { %719 = vst [vmem:[%s974_s4 + $0x8] sm:$0xff] %v687_v20   ;;  %v682_v22 = vpack.c.bf16 %v478_v21, %v475_v18 }
 0x1b8   :  { %v812_v23 = vpop.f32.mrf.mxu1 }
 0x1b9   :  { %683 = vst [vmem:[%s974_s4] sm:$0xff] %v682_v22  }
 0x1ba   :  { %v491_v24 = vpop.f32.mrf.mxu1 }
 0x1bc   :  { %v813_v25 = vpop.f32.mrf.mxu1 }
 0x1bd   :  { %v697_v26 = vpack.c.bf16 %v813_v25, %v812_v23 }
 0x1be   :  { %v494_v27 = vpop.f32.mrf.mxu1 }
 0x1bf   :  { %721 = vst [vmem:[%s974_s4 + $0x18] sm:$0xff] %v697_v26   ;;  %v692_v28 = vpack.c.bf16 %v494_v27, %v491_v24 }
 0x1c0   :  { %v816_v29 = vpop.f32.mrf.mxu1 }
 0x1c1   :  { %720 = vst [vmem:[%s974_s4 + $0x10] sm:$0xff] %v692_v28  }
 0x1c2   :  { %v507_v30 = vpop.f32.mrf.mxu1 }
 0x1c4   :  { %v817_v31 = vpop.f32.mrf.mxu1 }
 0x1c5   :  { %v707_v32 = vpack.c.bf16 %v817_v31, %v816_v29 }
 0x1c6   :  { %v510_v33 = vpop.f32.mrf.mxu1 }
 0x1c7   :  { %723 = vst [vmem:[%s974_s4 + $0x28] sm:$0xff] %v707_v32   ;;  %v702_v34 = vpack.c.bf16 %v510_v33, %v507_v30 }
 0x1c8   :  { %v820_v35 = vpop.f32.mrf.mxu1 }
 0x1c9   :  { %722 = vst [vmem:[%s974_s4 + $0x20] sm:$0xff] %v702_v34  }
 0x1ca   :  { %v523_v36 = vpop.f32.mrf.mxu1 }
 0x1cc   :  { %v821_v37 = vpop.f32.mrf.mxu1 }
 0x1cd   :  { %v717_v38 = vpack.c.bf16 %v821_v37, %v820_v35 }
 0x1ce   :  { %v526_v39 = vpop.f32.mrf.mxu1 }
 0x1cf   :  { %725 = vst [vmem:[%s974_s4 + $0x38] sm:$0xff] %v717_v38   ;;  %v712_v40 = vpack.c.bf16 %v526_v39, %v523_v36 }
 0x1d1   :  { %724 = vst [vmem:[%s974_s4 + $0x30] sm:$0xff] %v712_v40  }

</bundles_post_ra>
